<compile_context>
chip_gen: v5e
topology: v5e:2x2
jax: 0.10.0
libtpu: 0.0.40
codegen_flags: <defaults>
</compile_context>

<pallas_src>
import math
import functools

import jax
import jax.numpy as jnp
from jax import lax
from jax.experimental import pallas as pl
from jax.experimental.pallas import tpu as pltpu

EPS = 1e-6
MXU_DTYPE = jnp.bfloat16      # MXU operand dtype (f32 accumulation everywhere)


# ------------------------------ in-kernel math ------------------------------

def _layernorm(x, g, b):
    """torch-style LayerNorm: unbiased std, eps added to std.

    Divide replaced by EUP reciprocal (approx) with gamma folded into the
    scale, so the per-element VALU work is a single multiply.
    """
    d = x.shape[-1]
    mean = jnp.mean(x, axis=-1, keepdims=True)
    diff = x - mean
    var = jnp.sum(diff * diff, axis=-1, keepdims=True) * (1.0 / (d - 1))
    inv = pl.reciprocal(jnp.sqrt(var) + EPS, approx=True)   # EUP slot
    return diff * (g * inv) + b


# ----------------------------- Pallas kernels ------------------------------

def _attn_sublayer_kernel(*refs, h, scale, self_attn):
    """Fused: out = x + MHA(LN(x), kv, kv, mask) @ Wo  (one batch per step)."""
    if self_attn:
        (x_ref, mask_ref, g_ref, beta_ref,
         wqkv_ref, bqkv_ref, wo_ref, bo_ref, o_ref) = refs
    else:
        (x_ref, kv_ref, mask_ref, g_ref, beta_ref,
         wq_ref, bq_ref, wkv_ref, bkv_ref, wo_ref, bo_ref, o_ref) = refs

    x = x_ref[0]                                     # (Tq, D) f32 residual
    D = x.shape[-1]
    dk = D // h

    xn = _layernorm(x, g_ref[...], beta_ref[...]).astype(MXU_DTYPE)

    if self_attn:
        # single (Tq,D) x (D,3D) MXU contraction for Q|K|V
        qkv = jnp.dot(xn, wqkv_ref[...],
                      preferred_element_type=jnp.float32) + bqkv_ref[...]
        q, k, v = qkv[:, :D], qkv[:, D:2 * D], qkv[:, 2 * D:]
    else:
        q = jnp.dot(xn, wq_ref[...],
                    preferred_element_type=jnp.float32) + bq_ref[...]
        # memory arrives bf16; fused (Tk,D) x (D,2D) contraction for K|V
        kv = jnp.dot(kv_ref[0], wkv_ref[...],
                     preferred_element_type=jnp.float32) + bkv_ref[...]
        k, v = kv[:, :D], kv[:, D:]

    q = q.astype(MXU_DTYPE)
    k = k.astype(MXU_DTYPE)
    v = v.astype(MXU_DTYPE)

    # mask shared across heads: (1, Tk) or (Tq, Tk); additive -1e9 bias in f32
    mask = mask_ref[0]
    neg = jnp.where(mask == 0, jnp.float32(-1e9), jnp.float32(0.0))

    heads = []
    for hh in range(h):                              # static unroll over heads
        sl = slice(hh * dk, (hh + 1) * dk)
        # scores: contract on dk of both operands (no explicit transpose)
        s = lax.dot_general(q[:, sl], k[:, sl], (((1,), (1,)), ((), ())),
                            preferred_element_type=jnp.float32) * scale
        s = s + neg                                  # f32 masking (bf16-safe)
        s = s - jnp.max(s, axis=-1, keepdims=True)
        p = jnp.exp(s)
        p = p * pl.reciprocal(jnp.sum(p, axis=-1, keepdims=True), approx=True)
        heads.append(jnp.dot(p.astype(MXU_DTYPE), v[:, sl],
                             preferred_element_type=jnp.float32))

    # single K=D output projection on the concatenated (Tq, D) head outputs
    o = jnp.concatenate(heads, axis=-1).astype(MXU_DTYPE)
    o_ref[0] = x + bo_ref[...] + jnp.dot(o, wo_ref[...],
                                         preferred_element_type=jnp.float32)


def _ffn_sublayer_kernel(*refs, fuse_final):
    """Fused: out = x + FF2(relu(FF1(LN(x)))); DFF tiled as a reduction axis.

    Optionally applies the decoder's final LayerNorm as an epilogue.
    """
    if fuse_final:
        (x_ref, g_ref, beta_ref, w1_ref, b1_ref, w2_ref, b2_ref,
         gf_ref, bf_ref, o_ref, xn_ref, acc_ref) = refs
    else:
        (x_ref, g_ref, beta_ref, w1_ref, b1_ref, w2_ref, b2_ref,
         o_ref, xn_ref, acc_ref) = refs
        gf_ref = bf_ref = None

    k = pl.program_id(1)

    @pl.when(k == 0)
    def _():
        x = x_ref[...]
        xn_ref[...] = _layernorm(x, g_ref[...], beta_ref[...]).astype(xn_ref.dtype)
        acc_ref[...] = x + b2_ref[...]               # residual + FF2 bias, once

    h1 = jnp.dot(xn_ref[...], w1_ref[...],
                 preferred_element_type=jnp.float32) + b1_ref[...]
    h1 = jnp.maximum(h1, 0.0).astype(MXU_DTYPE)
    acc_ref[...] += jnp.dot(h1, w2_ref[...], preferred_element_type=jnp.float32)

    @pl.when(k == pl.num_programs(1) - 1)
    def _():
        y = acc_ref[...]
        if fuse_final:
            y = _layernorm(y, gf_ref[...], bf_ref[...])
        o_ref[...] = y


# ------------------------------ call wrappers -------------------------------

def _pick_row_tile(M):
    """Largest sublane-aligned row tile dividing M (MXU-M fed, fewer steps)."""
    for t in (1024, 512, 256, 128, 64, 32, 16, 8):
        if t <= M and M % t == 0:
            return t
    return M


def _pick_ff_tile(DFF):
    """DFF reduction tile: bounds VMEM independent of DFF at production size."""
    for t in (2048, 1024, 512):
        if t <= DFF and DFF % t == 0:
            return t
    return DFF


def attn_sublayer(x, kv, mask, norm_p, attn_p, h, self_attn):
    B, Tq, D = x.shape
    Mq, Tk = mask.shape[1], mask.shape[2]
    dk = D // h
    kern = functools.partial(_attn_sublayer_kernel, h=h,
                             scale=1.0 / math.sqrt(dk), self_attn=self_attn)
    shared = lambda b: (0, 0)
    per_b3 = lambda b: (b, 0, 0)

    g = norm_p["g"].reshape(1, D)
    beta = norm_p["b"].reshape(1, D)
    wo = attn_p["wo"].astype(MXU_DTYPE)
    bo = attn_p["bo"].reshape(1, D)

    if self_attn:
        wqkv = jnp.concatenate([attn_p["wq"], attn_p["wk"], attn_p["wv"]],
                               axis=1).astype(MXU_DTYPE)
        bqkv = jnp.concatenate([attn_p["bq"], attn_p["bk"],
                                attn_p["bv"]]).reshape(1, 3 * D)
        inputs = (x, mask, g, beta, wqkv, bqkv, wo, bo)
        in_specs = [
            pl.BlockSpec((1, Tq, D), per_b3),        # x (residual / Q / K / V)
            pl.BlockSpec((1, Mq, Tk), per_b3),       # mask, shared across heads
            pl.BlockSpec((1, D), shared),            # LN gamma
            pl.BlockSpec((1, D), shared),            # LN beta
            pl.BlockSpec((D, 3 * D), shared),        # Wq|Wk|Wv fused
            pl.BlockSpec((1, 3 * D), shared),        # bq|bk|bv fused
            pl.BlockSpec((D, D), shared),            # Wo
            pl.BlockSpec((1, D), shared),            # bo
        ]
    else:
        wq = attn_p["wq"].astype(MXU_DTYPE)
        bq = attn_p["bq"].reshape(1, D)
        wkv = jnp.concatenate([attn_p["wk"], attn_p["wv"]],
                              axis=1).astype(MXU_DTYPE)
        bkv = jnp.concatenate([attn_p["bk"], attn_p["bv"]]).reshape(1, 2 * D)
        inputs = (x, kv.astype(MXU_DTYPE), mask, g, beta, wq, bq, wkv, bkv, wo, bo)
        in_specs = [
            pl.BlockSpec((1, Tq, D), per_b3),        # x (residual / query src)
            pl.BlockSpec((1, Tk, D), per_b3),        # memory (K/V source, bf16)
            pl.BlockSpec((1, Mq, Tk), per_b3),       # mask, shared across heads
            pl.BlockSpec((1, D), shared),            # LN gamma
            pl.BlockSpec((1, D), shared),            # LN beta
            pl.BlockSpec((D, D), shared),            # Wq
            pl.BlockSpec((1, D), shared),            # bq
            pl.BlockSpec((D, 2 * D), shared),        # Wk|Wv fused
            pl.BlockSpec((1, 2 * D), shared),        # bk|bv fused
            pl.BlockSpec((D, D), shared),            # Wo
            pl.BlockSpec((1, D), shared),            # bo
        ]

    return pl.pallas_call(
        kern,
        out_shape=jax.ShapeDtypeStruct((B, Tq, D), jnp.float32),
        grid=(B,),
        in_specs=in_specs,
        out_specs=pl.BlockSpec((1, Tq, D), per_b3),
        compiler_params=pltpu.CompilerParams(
            dimension_semantics=("parallel",),
            vmem_limit_bytes=64 * 1024 * 1024),
    )(*inputs)


def ffn_sublayer(x, norm_p, w1, b1, w2, b2, final_norm=None):
    B, T, D = x.shape
    M = B * T
    DFF = w1.shape[1]
    tm = _pick_row_tile(M)
    tkf = _pick_ff_tile(DFF)
    fuse_final = final_norm is not None
    kern = functools.partial(_ffn_sublayer_kernel, fuse_final=fuse_final)

    shared2 = lambda i, k: (0, 0)
    per_row = lambda i, k: (i, 0)

    inputs = [x.reshape(M, D),
              norm_p["g"].reshape(1, D), norm_p["b"].reshape(1, D),
              w1.astype(MXU_DTYPE), b1.reshape(1, DFF),
              w2.astype(MXU_DTYPE), b2.reshape(1, D)]
    in_specs = [pl.BlockSpec((tm, D), per_row),
                pl.BlockSpec((1, D), shared2),
                pl.BlockSpec((1, D), shared2),
                pl.BlockSpec((D, tkf), lambda i, k: (0, k)),   # W1 k-tile
                pl.BlockSpec((1, tkf), lambda i, k: (0, k)),   # b1 k-tile
                pl.BlockSpec((tkf, D), lambda i, k: (k, 0)),   # W2 k-tile
                pl.BlockSpec((1, D), shared2)]
    if fuse_final:
        inputs += [final_norm["g"].reshape(1, D), final_norm["b"].reshape(1, D)]
        in_specs += [pl.BlockSpec((1, D), shared2),
                     pl.BlockSpec((1, D), shared2)]

    out = pl.pallas_call(
        kern,
        out_shape=jax.ShapeDtypeStruct((M, D), jnp.float32),
        grid=(M // tm, DFF // tkf),
        in_specs=in_specs,
        out_specs=pl.BlockSpec((tm, D), per_row),
        scratch_shapes=[pltpu.VMEM((tm, D), MXU_DTYPE),      # LN(x), MXU operand
                        pltpu.VMEM((tm, D), jnp.float32)],   # f32 accumulator
        compiler_params=pltpu.CompilerParams(
            dimension_semantics=("parallel", "arbitrary"),
            vmem_limit_bytes=64 * 1024 * 1024),
    )(*inputs)
    return out.reshape(B, T, D)


def decoder_forward(params, x, memory, src_mask, tgt_mask, h):
    layers = params["layers"]
    n = len(layers)
    for li, lp in enumerate(layers):
        # sublayer 0: x + SelfAttn(LN(x), LN(x), LN(x), tgt_mask)
        x = attn_sublayer(x, None, tgt_mask, lp["norm0"], lp["self_attn"], h,
                          self_attn=True)
        # sublayer 1: x + SrcAttn(LN(x), memory, memory, src_mask)
        x = attn_sublayer(x, memory, src_mask, lp["norm1"], lp["src_attn"], h,
                          self_attn=False)
        # sublayer 2: x + FFN(LN(x))  (+ fused final decoder LayerNorm on the
        # last layer, replacing a separate memory-bound pallas_call)
        x = ffn_sublayer(x, lp["norm2"], lp["ff_w1"], lp["ff_b1"],
                         lp["ff_w2"], lp["ff_b2"],
                         final_norm=params["final_norm"] if li == n - 1 else None)
    return x


# --------------------------- pure-JAX reference -----------------------------

def ref_layernorm(x, g, b):
    mean = x.mean(-1, keepdims=True)
    var = ((x - mean) ** 2).sum(-1, keepdims=True) / (x.shape[-1] - 1)
    return g * (x - mean) / (jnp.sqrt(var) + EPS) + b


def ref_mha(p, query, key, value, mask, h):
    B, Tq, D = query.shape
    dk = D // h

    def proj(x, w, b):
        return (x @ w + b).reshape(B, -1, h, dk).transpose(0, 2, 1, 3)

    q = proj(query, p["wq"], p["bq"])
    k = proj(key, p["wk"], p["bk"])
    v = proj(value, p["wv"], p["bv"])
    s = jnp.einsum("bhqd,bhkd->bhqk", q, k) / math.sqrt(dk)
    s = jnp.where(mask[:, None, :, :] == 0, -1e9, s)
    pr = jax.nn.softmax(s, axis=-1)
    o = jnp.einsum("bhqk,bhkd->bhqd", pr, v).transpose(0, 2, 1, 3).reshape(B, Tq, D)
    return o @ p["wo"] + p["bo"]


def ref_decoder(params, x, memory, src_mask, tgt_mask, h):
    for lp in params["layers"]:
        xn = ref_layernorm(x, lp["norm0"]["g"], lp["norm0"]["b"])
        x = x + ref_mha(lp["self_attn"], xn, xn, xn, tgt_mask, h)
        xn = ref_layernorm(x, lp["norm1"]["g"], lp["norm1"]["b"])
        x = x + ref_mha(lp["src_attn"], xn, memory, memory, src_mask, h)
        xn = ref_layernorm(x, lp["norm2"]["g"], lp["norm2"]["b"])
        x = x + jnp.maximum(xn @ lp["ff_w1"] + lp["ff_b1"], 0.0) @ lp["ff_w2"] + lp["ff_b2"]
    return ref_layernorm(x, params["final_norm"]["g"], params["final_norm"]["b"])


# --------------------------------- params -----------------------------------

def init_params(key, D, d_ff, N):
    keys = iter(jax.random.split(key, 64))

    def dense(shape):
        return (0.1 * jax.random.normal(next(keys), shape)).astype(jnp.float32)

    def attn_params():
        return dict(wq=dense((D, D)), bq=dense((D,)),
                    wk=dense((D, D)), bk=dense((D,)),
                    wv=dense((D, D)), bv=dense((D,)),
                    wo=dense((D, D)), bo=dense((D,)))

    def norm_params():
        return dict(g=jnp.ones((D,), jnp.float32), b=jnp.zeros((D,), jnp.float32))

    layer = dict(self_attn=attn_params(), src_attn=attn_params(),
                 ff_w1=dense((D, d_ff)), ff_b1=dense((d_ff,)),
                 ff_w2=dense((d_ff, D)), ff_b2=dense((D,)),
                 norm0=norm_params(), norm1=norm_params(), norm2=norm_params())
    # `clones` deep-copies the same layer N times (identical initial values).
    return dict(layers=[layer] * N, final_norm=norm_params())


# ---------------------------------- main -------------------------------------

if __name__ == "__main__":
    B, T, S, D, H, DFF, NLAYERS = 2, 8, 8, 32, 4, 64, 2

    root = jax.random.PRNGKey(0)
    k_p, k_x, k_m = jax.random.split(root, 3)
    params = init_params(k_p, D, DFF, NLAYERS)

    x = jax.random.normal(k_x, (B, T, D), dtype=jnp.float32)
    memory = jax.random.normal(k_m, (B, S, D), dtype=jnp.float32)
    src_mask = jnp.ones((B, 1, S), dtype=jnp.float32)                       # (B, 1, S)
    tgt_mask = jnp.broadcast_to(jnp.tril(jnp.ones((T, T), jnp.float32)),
                                (B, T, T))                                  # causal (B, T, T)

    out = decoder_forward(params, x, memory, src_mask, tgt_mask, H)
    out = jax.block_until_ready(out)

    ref = ref_decoder(params, x, memory, src_mask, tgt_mask, H)
    assert out.shape == (B, T, D)
    # tolerance covers bf16 MXU operands (f32 accumulation) across 2 layers
    # plus approximate EUP reciprocals in softmax/LayerNorm; set MXU_DTYPE to
    # jnp.float32 to recover ~1e-5-level agreement with the f32 reference.
    assert jnp.allclose(out, ref, atol=3e-2, rtol=3e-2), "Pallas output mismatch"

    print("KERNEL_OK")
</pallas_src>

<mosaic_0001>
module attributes {stable_mosaic.version = 11 : i64} {
  func.func @_attn_sublayer_kernel(%arg0: i32, %arg1: memref<1x8x32xf32, #tpu.memory_space<vmem>>, %arg2: memref<1x8x8xf32, #tpu.memory_space<vmem>>, %arg3: memref<1x32xf32, #tpu.memory_space<vmem>>, %arg4: memref<1x32xf32, #tpu.memory_space<vmem>>, %arg5: memref<32x96xbf16, #tpu.memory_space<vmem>>, %arg6: memref<1x96xf32, #tpu.memory_space<vmem>>, %arg7: memref<32x32xbf16, #tpu.memory_space<vmem>>, %arg8: memref<1x32xf32, #tpu.memory_space<vmem>>, %arg9: memref<1x8x32xf32, #tpu.memory_space<vmem>>) attributes {dimension_semantics = [#tpu.dimension_semantics<parallel>], iteration_bounds = array<i64: 2>, scalar_prefetch = 0 : i64, scratch_operands = 0 : i64, tpu.core_type = #tpu.core_type<tc>, window_params = [{transform_indices = @transform_0, window_bounds = array<i64: 1, 8, 32>}, {transform_indices = @transform_1, window_bounds = array<i64: 1, 8, 8>}, {pipeline_mode = #tpu.pipeline_mode<synchronous>, transform_indices = @transform_2, window_bounds = array<i64: 1, 32>}, {pipeline_mode = #tpu.pipeline_mode<synchronous>, transform_indices = @transform_3, window_bounds = array<i64: 1, 32>}, {pipeline_mode = #tpu.pipeline_mode<synchronous>, transform_indices = @transform_4, window_bounds = array<i64: 32, 96>}, {pipeline_mode = #tpu.pipeline_mode<synchronous>, transform_indices = @transform_5, window_bounds = array<i64: 1, 96>}, {pipeline_mode = #tpu.pipeline_mode<synchronous>, transform_indices = @transform_6, window_bounds = array<i64: 32, 32>}, {pipeline_mode = #tpu.pipeline_mode<synchronous>, transform_indices = @transform_7, window_bounds = array<i64: 1, 32>}, {transform_indices = @transform_8, window_bounds = array<i64: 1, 8, 32>}]} {
    %c0 = arith.constant 0 : index
    %c0_0 = arith.constant 0 : index
    %c0_1 = arith.constant 0 : index
    %0 = vector.load %arg1[%c0, %c0_0, %c0_1] : memref<1x8x32xf32, #tpu.memory_space<vmem>>, vector<1x8x32xf32>
    %1 = vector.shape_cast %0 : vector<1x8x32xf32> to vector<8x32xf32>
    %c0_2 = arith.constant 0 : index
    %c0_3 = arith.constant 0 : index
    %2 = vector.load %arg3[%c0_2, %c0_3] : memref<1x32xf32, #tpu.memory_space<vmem>>, vector<1x32xf32>
    %c0_4 = arith.constant 0 : index
    %c0_5 = arith.constant 0 : index
    %3 = vector.load %arg4[%c0_4, %c0_5] : memref<1x32xf32, #tpu.memory_space<vmem>>, vector<1x32xf32>
    %cst = arith.constant dense<0.000000e+00> : vector<8xf32>
    %4 = vector.multi_reduction <add>, %1, %cst [1] : vector<8x32xf32> to vector<8xf32>
    %5 = vector.shape_cast %4 : vector<8xf32> to vector<8x1xf32>
    %cst_6 = arith.constant 3.200000e+01 : f32
    %6 = vector.broadcast %cst_6 : f32 to vector<8x1xf32>
    %7 = arith.divf %5, %6 : vector<8x1xf32>
    %8 = vector.broadcast %7 : vector<8x1xf32> to vector<8x32xf32>
    %9 = arith.subf %1, %8 : vector<8x32xf32>
    %10 = arith.mulf %9, %9 : vector<8x32xf32>
    %cst_7 = arith.constant dense<0.000000e+00> : vector<8xf32>
    %11 = vector.multi_reduction <add>, %10, %cst_7 [1] : vector<8x32xf32> to vector<8xf32>
    %12 = vector.shape_cast %11 : vector<8xf32> to vector<8x1xf32>
    %cst_8 = arith.constant 0.0322580636 : f32
    %13 = vector.broadcast %cst_8 : f32 to vector<8x1xf32>
    %14 = arith.mulf %12, %13 : vector<8x1xf32>
    %15 = math.sqrt %14 : vector<8x1xf32>
    %cst_9 = arith.constant 9.99999997E-7 : f32
    %16 = vector.broadcast %cst_9 : f32 to vector<8x1xf32>
    %17 = arith.addf %15, %16 : vector<8x1xf32>
    %18 = tpu.reciprocal %17 {approx = true} : vector<8x1xf32> -> vector<8x1xf32>
    %19 = vector.broadcast %2 : vector<1x32xf32> to vector<8x32xf32>
    %20 = vector.broadcast %18 : vector<8x1xf32> to vector<8x32xf32>
    %21 = arith.mulf %19, %20 : vector<8x32xf32>
    %22 = arith.mulf %9, %21 : vector<8x32xf32>
    %23 = vector.broadcast %3 : vector<1x32xf32> to vector<8x32xf32>
    %24 = arith.addf %22, %23 : vector<8x32xf32>
    %25 = arith.truncf %24 : vector<8x32xf32> to vector<8x32xbf16>
    %c0_10 = arith.constant 0 : index
    %c0_11 = arith.constant 0 : index
    %26 = vector.load %arg5[%c0_10, %c0_11] : memref<32x96xbf16, #tpu.memory_space<vmem>>, vector<32x96xbf16>
    %cst_12 = arith.constant dense<0.000000e+00> : vector<8x96xf32>
    %27 = tpu.matmul %25, %26, %cst_12 {dimension_numbers = #tpu.dot_dimension_numbers<[1], [0], [0], [1], [0, 0, 1, 1], [], []>} : vector<8x32xbf16>, vector<32x96xbf16>, vector<8x96xf32> -> vector<8x96xf32>
    %c0_13 = arith.constant 0 : index
    %c0_14 = arith.constant 0 : index
    %28 = vector.load %arg6[%c0_13, %c0_14] : memref<1x96xf32, #tpu.memory_space<vmem>>, vector<1x96xf32>
    %29 = vector.broadcast %28 : vector<1x96xf32> to vector<8x96xf32>
    %30 = arith.addf %27, %29 : vector<8x96xf32>
    %31 = vector.extract_strided_slice %30 {offsets = [0, 0], sizes = [8, 32], strides = [1, 1]} : vector<8x96xf32> to vector<8x32xf32>
    %32 = vector.extract_strided_slice %30 {offsets = [0, 32], sizes = [8, 32], strides = [1, 1]} : vector<8x96xf32> to vector<8x32xf32>
    %33 = vector.extract_strided_slice %30 {offsets = [0, 64], sizes = [8, 32], strides = [1, 1]} : vector<8x96xf32> to vector<8x32xf32>
    %34 = arith.truncf %31 : vector<8x32xf32> to vector<8x32xbf16>
    %35 = arith.truncf %32 : vector<8x32xf32> to vector<8x32xbf16>
    %36 = arith.truncf %33 : vector<8x32xf32> to vector<8x32xbf16>
    %c0_15 = arith.constant 0 : index
    %c0_16 = arith.constant 0 : index
    %c0_17 = arith.constant 0 : index
    %37 = vector.load %arg2[%c0_15, %c0_16, %c0_17] : memref<1x8x8xf32, #tpu.memory_space<vmem>>, vector<1x8x8xf32>
    %38 = vector.shape_cast %37 : vector<1x8x8xf32> to vector<8x8xf32>
    %cst_18 = arith.constant 0.000000e+00 : f32
    %39 = vector.broadcast %cst_18 : f32 to vector<8x8xf32>
    %40 = arith.cmpf oeq, %38, %39 : vector<8x8xf32>
    %cst_19 = arith.constant -1.000000e+09 : f32
    %cst_20 = arith.constant 0.000000e+00 : f32
    %41 = vector.broadcast %cst_19 : f32 to vector<8x8xf32>
    %42 = vector.broadcast %cst_20 : f32 to vector<8x8xf32>
    %43 = arith.select %40, %41, %42 : vector<8x8xi1>, vector<8x8xf32>
    %44 = vector.extract_strided_slice %34 {offsets = [0, 0], sizes = [8, 8], strides = [1, 1]} : vector<8x32xbf16> to vector<8x8xbf16>
    %45 = vector.extract_strided_slice %35 {offsets = [0, 0], sizes = [8, 8], strides = [1, 1]} : vector<8x32xbf16> to vector<8x8xbf16>
    %cst_21 = arith.constant dense<0.000000e+00> : vector<8x8xf32>
    %46 = tpu.matmul %44, %45, %cst_21 {dimension_numbers = #tpu.dot_dimension_numbers<[1], [1], [0], [0], [0, 0, 1, 0], [], []>} : vector<8x8xbf16>, vector<8x8xbf16>, vector<8x8xf32> -> vector<8x8xf32>
    %cst_22 = arith.constant 0.353553385 : f32
    %47 = vector.broadcast %cst_22 : f32 to vector<8x8xf32>
    %48 = arith.mulf %46, %47 : vector<8x8xf32>
    %49 = arith.addf %48, %43 : vector<8x8xf32>
    %cst_23 = arith.constant dense<0xFF800000> : vector<8xf32>
    %50 = vector.multi_reduction <maximumf>, %49, %cst_23 [1] : vector<8x8xf32> to vector<8xf32>
    %51 = vector.shape_cast %50 : vector<8xf32> to vector<8x1xf32>
    %52 = vector.broadcast %51 : vector<8x1xf32> to vector<8x8xf32>
    %53 = arith.subf %49, %52 : vector<8x8xf32>
    %54 = math.exp %53 : vector<8x8xf32>
    %cst_24 = arith.constant dense<0.000000e+00> : vector<8xf32>
    %55 = vector.multi_reduction <add>, %54, %cst_24 [1] : vector<8x8xf32> to vector<8xf32>
    %56 = vector.shape_cast %55 : vector<8xf32> to vector<8x1xf32>
    %57 = tpu.reciprocal %56 {approx = true} : vector<8x1xf32> -> vector<8x1xf32>
    %58 = vector.broadcast %57 : vector<8x1xf32> to vector<8x8xf32>
    %59 = arith.mulf %54, %58 : vector<8x8xf32>
    %60 = arith.truncf %59 : vector<8x8xf32> to vector<8x8xbf16>
    %61 = vector.extract_strided_slice %36 {offsets = [0, 0], sizes = [8, 8], strides = [1, 1]} : vector<8x32xbf16> to vector<8x8xbf16>
    %cst_25 = arith.constant dense<0.000000e+00> : vector<8x8xf32>
    %62 = tpu.matmul %60, %61, %cst_25 {dimension_numbers = #tpu.dot_dimension_numbers<[1], [0], [0], [1], [0, 0, 1, 1], [], []>} : vector<8x8xbf16>, vector<8x8xbf16>, vector<8x8xf32> -> vector<8x8xf32>
    %63 = vector.extract_strided_slice %34 {offsets = [0, 8], sizes = [8, 8], strides = [1, 1]} : vector<8x32xbf16> to vector<8x8xbf16>
    %64 = vector.extract_strided_slice %35 {offsets = [0, 8], sizes = [8, 8], strides = [1, 1]} : vector<8x32xbf16> to vector<8x8xbf16>
    %cst_26 = arith.constant dense<0.000000e+00> : vector<8x8xf32>
    %65 = tpu.matmul %63, %64, %cst_26 {dimension_numbers = #tpu.dot_dimension_numbers<[1], [1], [0], [0], [0, 0, 1, 0], [], []>} : vector<8x8xbf16>, vector<8x8xbf16>, vector<8x8xf32> -> vector<8x8xf32>
    %cst_27 = arith.constant 0.353553385 : f32
    %66 = vector.broadcast %cst_27 : f32 to vector<8x8xf32>
    %67 = arith.mulf %65, %66 : vector<8x8xf32>
    %68 = arith.addf %67, %43 : vector<8x8xf32>
    %cst_28 = arith.constant dense<0xFF800000> : vector<8xf32>
    %69 = vector.multi_reduction <maximumf>, %68, %cst_28 [1] : vector<8x8xf32> to vector<8xf32>
    %70 = vector.shape_cast %69 : vector<8xf32> to vector<8x1xf32>
    %71 = vector.broadcast %70 : vector<8x1xf32> to vector<8x8xf32>
    %72 = arith.subf %68, %71 : vector<8x8xf32>
    %73 = math.exp %72 : vector<8x8xf32>
    %cst_29 = arith.constant dense<0.000000e+00> : vector<8xf32>
    %74 = vector.multi_reduction <add>, %73, %cst_29 [1] : vector<8x8xf32> to vector<8xf32>
    %75 = vector.shape_cast %74 : vector<8xf32> to vector<8x1xf32>
    %76 = tpu.reciprocal %75 {approx = true} : vector<8x1xf32> -> vector<8x1xf32>
    %77 = vector.broadcast %76 : vector<8x1xf32> to vector<8x8xf32>
    %78 = arith.mulf %73, %77 : vector<8x8xf32>
    %79 = arith.truncf %78 : vector<8x8xf32> to vector<8x8xbf16>
    %80 = vector.extract_strided_slice %36 {offsets = [0, 8], sizes = [8, 8], strides = [1, 1]} : vector<8x32xbf16> to vector<8x8xbf16>
    %cst_30 = arith.constant dense<0.000000e+00> : vector<8x8xf32>
    %81 = tpu.matmul %79, %80, %cst_30 {dimension_numbers = #tpu.dot_dimension_numbers<[1], [0], [0], [1], [0, 0, 1, 1], [], []>} : vector<8x8xbf16>, vector<8x8xbf16>, vector<8x8xf32> -> vector<8x8xf32>
    %82 = vector.extract_strided_slice %34 {offsets = [0, 16], sizes = [8, 8], strides = [1, 1]} : vector<8x32xbf16> to vector<8x8xbf16>
    %83 = vector.extract_strided_slice %35 {offsets = [0, 16], sizes = [8, 8], strides = [1, 1]} : vector<8x32xbf16> to vector<8x8xbf16>
    %cst_31 = arith.constant dense<0.000000e+00> : vector<8x8xf32>
    %84 = tpu.matmul %82, %83, %cst_31 {dimension_numbers = #tpu.dot_dimension_numbers<[1], [1], [0], [0], [0, 0, 1, 0], [], []>} : vector<8x8xbf16>, vector<8x8xbf16>, vector<8x8xf32> -> vector<8x8xf32>
    %cst_32 = arith.constant 0.353553385 : f32
    %85 = vector.broadcast %cst_32 : f32 to vector<8x8xf32>
    %86 = arith.mulf %84, %85 : vector<8x8xf32>
    %87 = arith.addf %86, %43 : vector<8x8xf32>
    %cst_33 = arith.constant dense<0xFF800000> : vector<8xf32>
    %88 = vector.multi_reduction <maximumf>, %87, %cst_33 [1] : vector<8x8xf32> to vector<8xf32>
    %89 = vector.shape_cast %88 : vector<8xf32> to vector<8x1xf32>
    %90 = vector.broadcast %89 : vector<8x1xf32> to vector<8x8xf32>
    %91 = arith.subf %87, %90 : vector<8x8xf32>
    %92 = math.exp %91 : vector<8x8xf32>
    %cst_34 = arith.constant dense<0.000000e+00> : vector<8xf32>
    %93 = vector.multi_reduction <add>, %92, %cst_34 [1] : vector<8x8xf32> to vector<8xf32>
    %94 = vector.shape_cast %93 : vector<8xf32> to vector<8x1xf32>
    %95 = tpu.reciprocal %94 {approx = true} : vector<8x1xf32> -> vector<8x1xf32>
    %96 = vector.broadcast %95 : vector<8x1xf32> to vector<8x8xf32>
    %97 = arith.mulf %92, %96 : vector<8x8xf32>
    %98 = arith.truncf %97 : vector<8x8xf32> to vector<8x8xbf16>
    %99 = vector.extract_strided_slice %36 {offsets = [0, 16], sizes = [8, 8], strides = [1, 1]} : vector<8x32xbf16> to vector<8x8xbf16>
    %cst_35 = arith.constant dense<0.000000e+00> : vector<8x8xf32>
    %100 = tpu.matmul %98, %99, %cst_35 {dimension_numbers = #tpu.dot_dimension_numbers<[1], [0], [0], [1], [0, 0, 1, 1], [], []>} : vector<8x8xbf16>, vector<8x8xbf16>, vector<8x8xf32> -> vector<8x8xf32>
    %101 = vector.extract_strided_slice %34 {offsets = [0, 24], sizes = [8, 8], strides = [1, 1]} : vector<8x32xbf16> to vector<8x8xbf16>
    %102 = vector.extract_strided_slice %35 {offsets = [0, 24], sizes = [8, 8], strides = [1, 1]} : vector<8x32xbf16> to vector<8x8xbf16>
    %cst_36 = arith.constant dense<0.000000e+00> : vector<8x8xf32>
    %103 = tpu.matmul %101, %102, %cst_36 {dimension_numbers = #tpu.dot_dimension_numbers<[1], [1], [0], [0], [0, 0, 1, 0], [], []>} : vector<8x8xbf16>, vector<8x8xbf16>, vector<8x8xf32> -> vector<8x8xf32>
    %cst_37 = arith.constant 0.353553385 : f32
    %104 = vector.broadcast %cst_37 : f32 to vector<8x8xf32>
    %105 = arith.mulf %103, %104 : vector<8x8xf32>
    %106 = arith.addf %105, %43 : vector<8x8xf32>
    %cst_38 = arith.constant dense<0xFF800000> : vector<8xf32>
    %107 = vector.multi_reduction <maximumf>, %106, %cst_38 [1] : vector<8x8xf32> to vector<8xf32>
    %108 = vector.shape_cast %107 : vector<8xf32> to vector<8x1xf32>
    %109 = vector.broadcast %108 : vector<8x1xf32> to vector<8x8xf32>
    %110 = arith.subf %106, %109 : vector<8x8xf32>
    %111 = math.exp %110 : vector<8x8xf32>
    %cst_39 = arith.constant dense<0.000000e+00> : vector<8xf32>
    %112 = vector.multi_reduction <add>, %111, %cst_39 [1] : vector<8x8xf32> to vector<8xf32>
    %113 = vector.shape_cast %112 : vector<8xf32> to vector<8x1xf32>
    %114 = tpu.reciprocal %113 {approx = true} : vector<8x1xf32> -> vector<8x1xf32>
    %115 = vector.broadcast %114 : vector<8x1xf32> to vector<8x8xf32>
    %116 = arith.mulf %111, %115 : vector<8x8xf32>
    %117 = arith.truncf %116 : vector<8x8xf32> to vector<8x8xbf16>
    %118 = vector.extract_strided_slice %36 {offsets = [0, 24], sizes = [8, 8], strides = [1, 1]} : vector<8x32xbf16> to vector<8x8xbf16>
    %cst_40 = arith.constant dense<0.000000e+00> : vector<8x8xf32>
    %119 = tpu.matmul %117, %118, %cst_40 {dimension_numbers = #tpu.dot_dimension_numbers<[1], [0], [0], [1], [0, 0, 1, 1], [], []>} : vector<8x8xbf16>, vector<8x8xbf16>, vector<8x8xf32> -> vector<8x8xf32>
    %120 = tpu.concatenate %62, %81, %100, %119 in 1 : vector<8x8xf32>, vector<8x8xf32>, vector<8x8xf32>, vector<8x8xf32> -> vector<8x32xf32>
    %121 = arith.truncf %120 : vector<8x32xf32> to vector<8x32xbf16>
    %c0_41 = arith.constant 0 : index
    %c0_42 = arith.constant 0 : index
    %122 = vector.load %arg8[%c0_41, %c0_42] : memref<1x32xf32, #tpu.memory_space<vmem>>, vector<1x32xf32>
    %123 = vector.broadcast %122 : vector<1x32xf32> to vector<8x32xf32>
    %124 = arith.addf %1, %123 : vector<8x32xf32>
    %c0_43 = arith.constant 0 : index
    %c0_44 = arith.constant 0 : index
    %125 = vector.load %arg7[%c0_43, %c0_44] : memref<32x32xbf16, #tpu.memory_space<vmem>>, vector<32x32xbf16>
    %cst_45 = arith.constant dense<0.000000e+00> : vector<8x32xf32>
    %126 = tpu.matmul %121, %125, %cst_45 {dimension_numbers = #tpu.dot_dimension_numbers<[1], [0], [0], [1], [0, 0, 1, 1], [], []>} : vector<8x32xbf16>, vector<32x32xbf16>, vector<8x32xf32> -> vector<8x32xf32>
    %127 = arith.addf %124, %126 : vector<8x32xf32>
    %c0_46 = arith.constant 0 : index
    %c0_47 = arith.constant 0 : index
    %c0_48 = arith.constant 0 : index
    %128 = vector.load %arg9[%c0_46, %c0_47, %c0_48] : memref<1x8x32xf32, #tpu.memory_space<vmem>>, vector<1x8x32xf32>
    %129 = vector.shape_cast %128 : vector<1x8x32xf32> to vector<8x32xf32>
    %130 = vector.shape_cast %127 : vector<8x32xf32> to vector<1x8x32xf32>
    tpu.vector_store %arg9[%c0_46, %c0_47, %c0_48], %130 {strides = array<i32>} : memref<1x8x32xf32, #tpu.memory_space<vmem>>, vector<1x8x32xf32>,
    return
  }
  func.func @transform_0(%arg0: i32) -> (i32, i32, i32) {
    %c0_i32 = arith.constant 0 : i32
    %c0_i32_0 = arith.constant 0 : i32
    %c0_i32_1 = arith.constant 0 : i32
    return %arg0, %c0_i32, %c0_i32_0 : i32, i32, i32
  }
  func.func @transform_1(%arg0: i32) -> (i32, i32, i32) {
    %c0_i32 = arith.constant 0 : i32
    %c0_i32_0 = arith.constant 0 : i32
    %c0_i32_1 = arith.constant 0 : i32
    return %arg0, %c0_i32, %c0_i32_0 : i32, i32, i32
  }
  func.func @transform_2(%arg0: i32) -> (i32, i32) {
    %c0_i32 = arith.constant 0 : i32
    %c0_i32_0 = arith.constant 0 : i32
    %c0_i32_1 = arith.constant 0 : i32
    return %c0_i32, %c0_i32_0 : i32, i32
  }
  func.func @transform_3(%arg0: i32) -> (i32, i32) {
    %c0_i32 = arith.constant 0 : i32
    %c0_i32_0 = arith.constant 0 : i32
    %c0_i32_1 = arith.constant 0 : i32
    return %c0_i32, %c0_i32_0 : i32, i32
  }
  func.func @transform_4(%arg0: i32) -> (i32, i32) {
    %c0_i32 = arith.constant 0 : i32
    %c0_i32_0 = arith.constant 0 : i32
    %c0_i32_1 = arith.constant 0 : i32
    return %c0_i32, %c0_i32_0 : i32, i32
  }
  func.func @transform_5(%arg0: i32) -> (i32, i32) {
    %c0_i32 = arith.constant 0 : i32
    %c0_i32_0 = arith.constant 0 : i32
    %c0_i32_1 = arith.constant 0 : i32
    return %c0_i32, %c0_i32_0 : i32, i32
  }
  func.func @transform_6(%arg0: i32) -> (i32, i32) {
    %c0_i32 = arith.constant 0 : i32
    %c0_i32_0 = arith.constant 0 : i32
    %c0_i32_1 = arith.constant 0 : i32
    return %c0_i32, %c0_i32_0 : i32, i32
  }
  func.func @transform_7(%arg0: i32) -> (i32, i32) {
    %c0_i32 = arith.constant 0 : i32
    %c0_i32_0 = arith.constant 0 : i32
    %c0_i32_1 = arith.constant 0 : i32
    return %c0_i32, %c0_i32_0 : i32, i32
  }
  func.func @transform_8(%arg0: i32) -> (i32, i32, i32) {
    %c0_i32 = arith.constant 0 : i32
    %c0_i32_0 = arith.constant 0 : i32
    %c0_i32_1 = arith.constant 0 : i32
    return %arg0, %c0_i32, %c0_i32_0 : i32, i32, i32
  }
}

</mosaic_0001>

<bundles_post_ra>
// kernel: tpu_custom_call.1
= control target key start
LH: loop header
LB: loop body
LE: loop exit
PB: predicated region body
PF: predicated region fallthrough
CT: control target
= control target key end

     0   :  { %s1574_s0 = inlined_call_operand.hbm [shape: f32[2,8,32], index: 0, kind: input, shape index: {}]   ;;  %s1575_s1 = inlined_call_operand.hbm [shape: f32[2,8,8], index: 1, kind: input, shape index: {}]   ;;  %s1576_s2 = inlined_call_operand.vmem [shape: f32[1,32], index: 2, kind: input, shape index: {}]   ;;  %s1577_s3 = inlined_call_operand.vmem [shape: f32[1,32], index: 3, kind: input, shape index: {}]   ;;  %s1578_s4 = inlined_call_operand.hbm [shape: bf16[32,96], index: 4, kind: input, shape index: {}]   ;;  %s1579_s5 = inlined_call_operand.vmem [shape: f32[1,96], index: 5, kind: input, shape index: {}]   ;;  %s1580_s6 = inlined_call_operand.hbm [shape: bf16[32,32], index: 6, kind: input, shape index: {}]   ;;  %s1581_s7 = inlined_call_operand.vmem [shape: f32[1,32], index: 7, kind: input, shape index: {}]   ;;  %s1582_s8 = inlined_call_operand.hbm [shape: f32[2,8,32], index: 8, kind: output, shape index: {}]  }
   0x1   :  { %1588 = sst [smem:[#allocation21_spill]] %s1578_s4 }
   0x2   :  { %1589 = sst [smem:[#allocation22_spill]] %s1580_s6 }
   0x3   :  { %13 = vsyncpa [#allocation3], 0 }
   0x4   :  { %15 = vsyncpa [#allocation3 + $0x1], 0 }
   0x5   :  { %16 = vsyncpa [#allocation6], 0 }
   0x6   :  { %18 = vsyncpa [#allocation6 + $0x1], 0 }
   0x7   :  { %19 = vsyncpa [#allocation9], 0 }
   0x8   :  { %20 = vsyncpa [#allocation4], 0 }
   0x9   :  { %22 = vsyncpa [#allocation4 + $0x1], 0  ;;  %s1331_s27 = smov 0   ;;  %s1333_s28 = smov 0  }
   0xa   :  { %s1335_s29 = smov 0   ;;  %s1337_s30 = smov 0  }
   0xb LB: > { %1590 = sst [smem:[#allocation16_spill]] %s1260_s29  ;;  %s1355_s12 = sadd.s32 4294967295, %s1264_s30   ;;  %s1264_s30 = sphi %s1337_s30, %s1606_s30   ;;  %s1260_s29 = sphi %s1335_s29, %s1608_s29   ;;  %s1256_s28 = sphi %s1333_s28, %s1610_s28   ;;  %s1252_s27 = sphi %s1331_s27, %s1609_s27  }
   0xc   : > { %1591 = sst [smem:[#allocation17_spill]] %s1264_s30  ;;  %p902_p0 = scmp.ge.s32.totalorder %s1264_s30, 1 }
   0xd   : > { %s1592_s4 = sld [smem:[#allocation21_spill]]  ;;  %p49_p1 = scmp.eq.s32.totalorder %s1355_s12, 0 }
   0xe   : > { %p237_p2 = scmp.lt.s32.totalorder %s1264_s30, 3  ;;  %s1266_s14 = smov [#allocation7]  }
   0xf   : > { %s256_s15 = sshll.u32 %s1266_s14, 4  ;;  %s1594_s6 = sld [smem:[#allocation22_spill]]  ;;  %s257_s15 = int_to_ptr.vmem [resolvable:$true] %s256_s15 }
  0x10   : > { %p1360_p3 = pnand %p902_p0, %p237_p2  ;;  %s1267_s19 = smov [#allocation8]  }
  0x11   : > { %s273_s20 = sshll.u32 %s1267_s19, 4  ;;  %s1268_s21 = smov 64   ;;  %s274_s20 = int_to_ptr.vmem [resolvable:$true] %s273_s20 }
  0x12   : > { %p964_p4 = pneg %p1360_p3  ;;  %s1269_s22 = smov 4  }
  0x13   : > { %s254_s11 = sshll.u32 %s1592_s4, 4  ;;  %s901_s23 = sadd.s32 4294967294, %s1264_s30   ;;  %s255_s11 = int_to_ptr.hbm [resolvable:$true] %s254_s11 }
  0x14   : > { %p965_p6 = pnand %p964_p4, %p49_p1  ;;  %s1374_s24 = sadd.s32 1, %s1264_s30  }
  0x15   : > { %s271_s18 = sshll.u32 %s1594_s6, 4  ;;  %1595 = sst [smem:[#allocation18_spill]] %s1374_s24  ;;  %s272_s18 = int_to_ptr.hbm [resolvable:$true] %s271_s18 }
  0x16   : > { %967 = dma.hbm_to_vmem [thread:$0]  (!%p965_p6), %s255_s11, 256, %s257_s15, [#allocation6], %s1268_s21, %s1268_s21, %s1269_s22  }
  0x17   : > { %970 = dma.hbm_to_vmem [thread:$0]  (!%p965_p6), %s272_s18, 256, %s274_s20, [#allocation9], %s1268_s21, %s1268_s21, %s1269_s22  }
  0x18   : > { %s32_s25 = ssub.s32 %s1264_s30, %s1374_s24  ;;  %s35_s26 = sadd.s32 1, %s1260_s29 }
  0x19   : > { %p33_p7 = scmp.eq.s32.totalorder %s32_s25, 0  ;;  %p42_p8 = scmp.ne.s32.totalorder %s1260_s29, %s1256_s28 }
  0x1a   : > { %p43_p9 = scmp.eq.s32.totalorder %s1264_s30, 0  ;;  %p48_p10 = scmp.ne.s32.totalorder %s1256_s28, %s1252_s27 }
  0x1b   : > { %s1385_s9 = scalar_select %p33_p7, %s1260_s29, %s35_s26  }
  0x1c   : > { %p1387_p11 = por %p43_p9, %p42_p8  ;;  %p1393_p12 = por %p49_p1, %p48_p10 }
  0x1d   : > { %1596 = sst [smem:[#allocation19_spill]] %s1385_s9  ;;  %p224_p13 = scmp.eq.s32.totalorder %s1355_s12, 1 }
  0x1e   : > { %p230_p0 = scmp.eq.s32.totalorder %s901_s23, 1  ;;  %p984_p2 = scmp.lt.s32.totalorder %s1264_s30, 2 }
  0x1f   : > { %s290_s14 = sand.u32 1, %s1260_s29   ;;  %p1400_p4 = por %p224_p13, %p42_p8 }
  0x20   : > { %p1404_p6 = por %p230_p0, %p48_p10  ;;  %s1408_s17 = sshll.u32 %s290_s14, 3 }
  0x21   : > { %s907_s18 = sshll.u32 %s1264_s30, 3  ;;  %s294_s22 = scalar_lea.vmem [#allocation2], %s1408_s17 }
  0x22   : > { %s1600_s16 = scalar_select %p1404_p6, 1, 0 }
  0x23   : > { %s298_s21 = scalar_lea.hbm %s1574_s0, %s907_s18  ;;  %s302_s23 = sshll.u32 %s294_s22, 4  ;;  %s303_s23 = int_to_ptr.vmem [resolvable:$true] %s302_s23 }
  0x24   : > { %1601 = sst [smem:[#allocation20_spill]] %s1600_s16  ;;  %s300_s25 = sshll.u32 %s298_s21, 4  ;;  %s301_s25 = int_to_ptr.hbm [resolvable:$true] %s300_s25 }
  0x25   : > { %p1417_p7 = pnand %p984_p2, %p1387_p11  ;;  %s317_s9 = scalar_lea.hbm %s1575_s1, %s907_s18 }
  0x26   : > { %s309_s29 = sand.u32 1, %s1264_s30   ;;  %s291_s24 = scalar_lea.sflag [#allocation3], %s290_s14 }
  0x27   : > { %s1126_s19 = sshra.s32 %s301_s25, 4  ;;  %p1130_p9 = pneg %p1417_p7  ;;  %s1127_s19 = int_to_ptr.hbm [resolvable:$true] %s1126_s19 }
  0x28   : > { %s1128_s20 = scalar_lea.hbm %s1127_s19, 8  ;;  %s1133_s22 = scalar_lea.hbm %s1574_s0, 16 }
  0x29   : > { %p1129_p8 = scmp.ne.s32.totalorder %s1127_s19, %s1128_s20  ;;  %p1134_p13 = scmp.lt.s32.totalorder %s1127_s19, %s1574_s0 }
  0x2a   : > { %p1135_p0 = scmp.lt.s32.totalorder %s1133_s22, %s1128_s20 }
  0x2b   : > { %p1131_p10 = pnand %p1130_p9, %p1129_p8 }
  0x2c   : > { %p1136_p2 = por %p1135_p0, %p1134_p13 }
  0x2d   : > { %p1132_p11 = pneg %p1131_p10 }
  0x2f   : > { %p1137_p5 = pnand %p1136_p2, %p1132_p11 }
  0x31   : > { %1140 = shalt.err (!%p1137_p5)
}
  0x32   : > { %974 = dma.hbm_to_vmem [thread:$0]  (!%p1417_p7), %s301_s25, 128, %s303_s23, %s291_s24  }
  0x33   : > { %s319_s14 = sshll.u32 %s317_s9, 4  ;;  %s313_s18 = scalar_lea.vmem [#allocation5], %s1408_s17  ;;  %s320_s14 = int_to_ptr.hbm [resolvable:$true] %s319_s14 }
  0x34   : > { %s321_s30 = sshll.u32 %s313_s18, 4  ;;  %s310_s10 = scalar_lea.sflag [#allocation6], %s309_s29  ;;  %s322_s30 = int_to_ptr.vmem [resolvable:$true] %s321_s30 }
  0x35   : > { %s1156_s21 = sshra.s32 %s320_s14, 4  ;;  %s1163_s22 = scalar_lea.hbm %s1575_s1, 16  ;;  %s1157_s21 = int_to_ptr.hbm [resolvable:$true] %s1156_s21 }
  0x36   : > { %s1158_s16 = scalar_lea.hbm %s1157_s21, 8  ;;  %p1164_p5 = scmp.lt.s32.totalorder %s1157_s21, %s1575_s1 }
  0x37   : > { %p1159_p8 = scmp.ne.s32.totalorder %s1157_s21, %s1158_s16  ;;  %p1165_p13 = scmp.lt.s32.totalorder %s1163_s22, %s1158_s16 }
  0x39   : > { %p1161_p10 = pnand %p1159_p8, %p1130_p9  ;;  %p1166_p0 = por %p1165_p13, %p1164_p5 }
  0x3b   : > { %p1162_p11 = pneg %p1161_p10 }
  0x3d   : > { %p1167_p2 = pnand %p1166_p0, %p1162_p11 }
  0x3f   : > { %1170 = shalt.err (!%p1167_p2)
}
  0x40   : > { %977 = dma.hbm_to_vmem [thread:$0]  (!%p1417_p7), %s320_s14, 128, %s322_s30, %s310_s10  }
  0x41   : > { %330 = sbr.rel (%p1360_p3) target bundleno = 1419 (0x58b), region = 52  ;;  %s1453_s29 = sand.u32 (!%p1360_p3), 1, %s1256_s28  }
  0x42   : > { %s1456_s9 = sshll.u32 (!%p1360_p3), %s1453_s29, 3  ;;  %s333_s17 = scalar_lea.sflag (!%p1360_p3), [#allocation3], %s1453_s29 }
  0x43   : > { %s336_s16 = scalar_lea.vmem (!%p1360_p3), [#allocation2], %s1456_s9 }
  0x46   : > { %1231 = dma.done.wait (%p1393_p12), %s333_s17, 128  }
  0x47   : > { %1233 = vsyncadd (%p1393_p12), %s333_s17, 4294967168  ;;  %s342_s30 = sand.u32 1, %s1355_s12   ;;  %s346_s23 = scalar_lea.vmem [#allocation5], %s1456_s9 }
  0x48   : > { %s343_s13 = scalar_lea.sflag [#allocation6], %s342_s30 }
  0x49   : > { %1235 = dma.done.wait (%p1393_p12), %s343_s13, 128  }
  0x4a   : > { %1237 = vsyncadd (%p1393_p12), %s343_s13, 4294967168 }
  0x4b   : > { %1239 = dma.done.wait (%p49_p1), [#allocation6], 256  }
  0x4c   : > { %1241 = vsyncadd (%p49_p1), [#allocation6], 4294967040 }
  0x4d   : > { %1243 = dma.done.wait (%p49_p1), [#allocation9], 256  }
  0x4e   : > { %1245 = vsyncadd (%p49_p1), [#allocation9], 4294967040  ;;  %vm399_vm0 = vcmask 261120   ;;  %v1478_v0 = vld [vmem:[%s336_s16] sm:$0xff]  ;;  %v1270_v2 = vmov 32.0   ;;  %s1271_s10 = smov 104  }
  0x4f   : > { %v400_v1 = vsel %vm399_vm0, %v1478_v0, 0.0  ;;  %1044 = vrcp.f32 %v1270_v2  ;;  %v947_v14 = vld [vmem:[#allocation7 + $0x8] sm:$0xff]  ;;  %v946_v15 = vld [vmem:[#allocation7] sm:$0xff]  ;;  %s1272_s21 = smov 120   ;;  %s1273_s19 = smov 96   ;;  %vm486_vm4 = vcmask 64512  }
  0x50   : > { %401 = vadd.xlane.f32.xlu0 %v400_v1  ;;  %470 = vmatpush.bf16.msra.mxu0 %v947_v14  ;;  %v1040_v29 = vld [vmem:[%s1576_s2] ss:$0 sm:$0xff]  ;;  %s1274_s20 = smov 72   ;;  %s1275_s22 = smov 88   ;;  %v478_v54 = vld [vmem:[%s346_s23] sm:$0xff]  ;;  %v1278_v56 = vmov 0.0  }
  0x51   : > { %v1041_v32 = vld [vmem:[%s1577_s3] ss:$0 sm:$0xff]  ;;  %s1276_s4 = smov 112   ;;  %s1277_s24 = smov 80   ;;  %vm479_vm5 = vcmp.eq.f32.partialorder %v478_v54, 0.0  ;;  %vm525_vm6 = vcmask 1043456  }
  0x52   : > { %v1042_v36 = vld [vmem:[%s1579_s5] ss:$0 sm:$0xff]  ;;  %v480_v57 = vsel %vm479_vm5, -1e+09, %v1278_v56  ;;  %s1279_s17 = smov 64   ;;  %s1280_s16 = smov 56  }
  0x53   : > { %s1281_s30 = smov 40   ;;  %s1282_s13 = smov 48   ;;  %vm729_vm7 = vcmask 130048   ;;  %vm731_vm8 = vcmask 195584  }
  0x54   : > { %471 = vmatpush.bf16.msra.mxu0 %v946_v15  ;;  %s1283_s23 = smov 8   ;;  %s1284_s11 = smov 24  }
  0x55   : > { %v1045_v3 = vpop.eup %1044  ;;  %s1285_s25 = smov 16   ;;  %s943_s26 = sshll.u32 %s1355_s12, 3 }
  0x56   : > { %v404_v4 = vmul.f32 32.0, %v1045_v3  ;;  %vm408_vm1 = vweird.f32 %v1045_v3  ;;  %s774_s12 = scalar_lea.sflag [#allocation4], %s1453_s29 }
  0x58   : > { %v405_v5 = vsub.f32 1.0, %v404_v4 }
  0x5a   : > { %v406_v6 = vmul.f32 %v1045_v3, %v405_v5 }
  0x5c   : > { %v407_v7 = vadd.f32 %v1045_v3, %v406_v6 }
  0x5e   : > { %v409_v8 = vsel %vm408_vm1, %v1045_v3, %v407_v7 }
  0xc3   : > { %v402_v9 = vpop.xlane.xlu0 %401 }
  0xc4   : > { %v410_v10 = vmul.f32 %v409_v8, %v402_v9 }
  0xc6   : > { %v411_v11 = vsub.f32 %v1478_v0, %v410_v10 }
  0xc8   : > { %v412_v12 = vmul.f32 %v411_v11, %v411_v11 }
  0xca   : > { %v413_v13 = vsel %vm399_vm0, %v412_v12, 0.0 }
  0xcb   : > { %414 = vadd.xlane.f32.xlu0 %v413_v13 }
 0x13e   : > { %v415_v16 = vpop.xlane.xlu0 %414 }
 0x13f   : > { %v416_v17 = vmul.f32 0.032258064, %v415_v16 }
 0x141   : > { %1046 = vrsqrt.f32 %v416_v17  ;;  %vm424_vm2 = vcmp.eq.f32.partialorder %v416_v17, inf  ;;  %v427_v25 = vand.u32 2147483648, %v416_v17  ;;  %vm426_vm3 = vcmp.eq.f32.partialorder %v416_v17, 0.0 }
 0x147   : > { %v1047_v18 = vpop.eup %1046 }
 0x148   : > { %v418_v19 = vmul.f32 %v1047_v18, %v416_v17 }
 0x14a   : > { %v419_v20 = vmul.f32 %v1047_v18, %v418_v19 }
 0x14c   : > { %v420_v21 = vmul.f32 0.5, %v419_v20 }
 0x14e   : > { %v421_v22 = vsub.f32 1.5, %v420_v21 }
 0x150   : > { %v422_v23 = vmul.f32 %v1047_v18, %v421_v22 }
 0x152   : > { %v423_v24 = vmul.f32 %v422_v23, %v416_v17 }
 0x154   : > { %v425_v26 = vsel %vm424_vm2, %v416_v17, %v423_v24 }
 0x155   : > { %v428_v27 = vsel %vm426_vm3, %v427_v25, %v425_v26 }
 0x156   : > { %v429_v28 = vadd.f32 1e-06, %v428_v27 }
 0x158   : > { %1048 = vrcp.f32 %v429_v28 }
 0x15e   : > { %v1049_v30 = vpop.eup %1048 }
 0x15f   : > { %v434_v31 = vmul.f32 %v1049_v30, %v1040_v29 }
 0x161   : > { %v435_v33 = vmul.f32 %v434_v31, %v411_v11 }
 0x163   : > { %v439_v34 = vadd.f32 %v1041_v32, %v435_v33 }
 0x165   : > { %v440_v35 = vpack.c.bf16 %v439_v34, %v439_v34 }
 0x167   : > { %924 = vmatmul.msk.bf16.vlgmr.msra.gmra.mxu0 %vm399_vm0, %v440_v35 }
 0x1e4   : > { %v473_v37 = vpop.f32.mrf.mxu0 }
 0x1e5   : > { %v474_v38 = vadd.f32 %v1042_v36, %v473_v37 }
 0x1e7   : > { %v477_v39 = vpack.c.bf16 %v474_v38, %v474_v38 }
 0x1e9   : > { %v482_v40 = vunpack.c.l.b16 %v477_v39 }
 0x1eb   : > { %v1494_v41 = vpack.c.b16 %v482_v40, %v482_v40 }
 0x1ec   : > { %v475_v42 = vpop.f32.mrf.mxu0 }
 0x1ed   : > { %658 = vrot.lane.b32.xlu0 %v1494_v41, %s1271_s10  ;;  %542 = vrot.lane.b32.xlu2 %v1494_v41, %s1272_s21  ;;  %s784_s21 = scalar_lea.hbm %s1582_s8, %s943_s26 }
 0x1ee   : > { %484 = vrot.lane.b32.xlu1 %v1494_v41, %s1273_s19  ;;  %s394_s19 = scalar_lea.vmem [#allocation10], %s1456_s9  ;;  %s1206_s9 = scalar_lea.hbm %s1582_s8, 16 }
 0x1f5   : > { %660 = vrot.lane.b32.xlu2 %v1494_v41, %s1274_s20  ;;  %s786_s20 = sshll.u32 %s394_s19, 4  ;;  %s787_s20 = int_to_ptr.vmem [resolvable:$true] %s786_s20 }
 0x1f6   : > { %544 = vrot.lane.b32.xlu1 %v1494_v41, %s1275_s22  ;;  %s788_s22 = sshll.u32 %s784_s21, 4  ;;  %s789_s22 = int_to_ptr.hbm [resolvable:$true] %s788_s22 }
 0x1fd   : > { %600 = vrot.lane.b32.xlu2 %v1494_v41, %s1276_s4  ;;  %s1200_s4 = sshra.s32 %s789_s22, 4  ;;  %s1201_s4 = int_to_ptr.hbm [resolvable:$true] %s1200_s4 }
 0x1fe   : > { %602 = vrot.lane.b32.xlu1 %v1494_v41, %s1277_s24  ;;  %s1202_s24 = scalar_lea.hbm %s1201_s4, 8  ;;  %p1207_p7 = scmp.lt.s32.totalorder %s1201_s4, %s1582_s8 }
 0x1ff   : > { %p1203_p1 = scmp.ne.s32.totalorder %s1201_s4, %s1202_s24  ;;  %p1208_p9 = scmp.lt.s32.totalorder %s1206_s9, %s1202_s24 }
 0x201   : > { %p1204_p3 = pnand %p1203_p1, %p1400_p4  ;;  %p1209_p8 = por %p1208_p9, %p1207_p7 }
 0x203   : > { %p1205_p12 = pneg %p1204_p3 }
 0x205   : > { %p1210_p10 = pnand %p1209_p8, %p1205_p12 }
 0x247   : > { %v543_v43 = vpop.permute.xlu2 %542 }
 0x24f   : > { %v661_v46 = vpop.permute.xlu2 %660 }
 0x250   : > { %v666_v49 = vsel %vm486_vm4, %v661_v46, 0 }
 0x257   : > { %v601_v52 = vpop.permute.xlu2 %600 }
 0x25f   : > { %v659_v53 = vpop.permute.xlu0 %658 }
 0x260   : > { %v485_v44 = vpop.permute.xlu1 %484 }
 0x261   : > { %v491_v45 = vsel %vm486_vm4, %v485_v44, 0 }
 0x262   : > { %500 = vmatpush.bf16.xpose.msra.mxu1 %v491_v45 }
 0x268   : > { %v545_v47 = vpop.permute.xlu1 %544 }
 0x269   : > { %925 = vmatmul.msk.bf16.vlgmr.msra.gmra.mxu1 %vm486_vm4, %v477_v39  ;;  %v550_v48 = vsel %vm486_vm4, %v545_v47, 0 }
 0x26a   : > { %559 = vmatpush.bf16.xpose.msra.mxu3 %v550_v48 }
 0x270   : > { %v603_v50 = vpop.permute.xlu1 %602 }
 0x271   : > { %927 = vmatmul.msk.bf16.vlgmr.msra.gmra.mxu3 %vm486_vm4, %v543_v43  ;;  %v608_v51 = vsel %vm486_vm4, %v603_v50, 0 }
 0x272   : > { %675 = vmatpush.bf16.xpose.msrb.mxu3 %v666_v49  ;;  %617 = vmatpush.bf16.xpose.msrb.mxu0 %v608_v51 }
 0x279   : > { %929 = vmatmul.msk.bf16.vlgmr.msrb.gmra.mxu0 %vm486_vm4, %v601_v52 }
 0x281   : > { %931 = vmatmul.msk.bf16.vlgmr.msrb.gmra.mxu3 %vm486_vm4, %v659_v53 }
 0x2e6   : > { %v502_v55 = vpop.f32.mrf.mxu1 }
 0x2e7   : > { %v506_v58 = vmul.f32 0.35355338, %v502_v55 }
 0x2e9   : > { %v507_v59 = vadd.f32 %v506_v58, %v480_v57 }
 0x2eb   : > { %v508_v60 = vsel %vm486_vm4, %v507_v59, -inf }
 0x2ec   : > { %509 = vmax.xlane.f32.xlu1 %v508_v60 }
 0x2ee   : > { %v504_v61 = vpop.f32.mrf.mxu1 }
 0x2f4   : > { %v561_v62 = vpop.f32.mrf.mxu3 }
 0x2f5   : > { %v565_v63 = vmul.f32 0.35355338, %v561_v62 }
 0x2f6   : > { %v619_v1 = vpop.f32.mrf.mxu0 }
 0x2f7   : > { %v566_v2 = vadd.f32 %v565_v63, %v480_v57  ;;  %v623_v3 = vmul.f32 0.35355338, %v619_v1 }
 0x2f9   : > { %v567_v4 = vsel %vm486_vm4, %v566_v2, -inf  ;;  %v624_v6 = vadd.f32 %v623_v3, %v480_v57  ;;  %v949_v3 = vld [vmem:[#allocation8 + $0x8] sm:$0xff] }
 0x2fa   : > { %568 = vmax.xlane.f32.xlu2 %v567_v4  ;;  %764 = vmatpush.bf16.msra.mxu0 %v949_v3  ;;  %v948_v4 = vld [vmem:[#allocation8] sm:$0xff] }
 0x2fb   : > { %v625_v8 = vsel %vm486_vm4, %v624_v6, -inf }
 0x2fc   : > { %v563_v5 = vpop.f32.mrf.mxu3 }
 0x2fe   : > { %v621_v7 = vpop.f32.mrf.mxu0  ;;  %765 = vmatpush.bf16.msra.mxu0 %v948_v4 }
 0x302   : > { %626 = vmax.xlane.f32.xlu2 %v625_v8 }
 0x304   : > { %v677_v9 = vpop.f32.mrf.mxu3 }
 0x305   : > { %v681_v10 = vmul.f32 0.35355338, %v677_v9 }
 0x307   : > { %v682_v11 = vadd.f32 %v681_v10, %v480_v57 }
 0x309   : > { %v683_v12 = vsel %vm486_vm4, %v682_v11, -inf }
 0x30a   : > { %684 = vmax.xlane.f32.xlu0 %v683_v12  ;;  %v1043_v12 = vld [vmem:[%s1581_s7] ss:$0 sm:$0xff] }
 0x30c   : > { %v679_v13 = vpop.f32.mrf.mxu3 }
 0x30d   : > { %v738_v13 = vadd.f32 %v1043_v12, %v1478_v0 }
 0x31a   : > { %520 = vrot.lane.b32.xlu2 %v1494_v41, %s1279_s17 }
 0x31e   : > { %579 = vrot.lane.b32.xlu0 %v1494_v41, %s1280_s16 }
 0x322   : > { %695 = vrot.lane.b32.xlu2 %v1494_v41, %s1281_s30 }
 0x326   : > { %637 = vrot.lane.b32.xlu0 %v1494_v41, %s1282_s13 }
 0x35f   : > { %v510_v14 = vpop.xlane.xlu1 %509 }
 0x360   : > { %v511_v15 = vsub.f32 %v507_v59, %v510_v14 }
 0x362   : > { %v512_v16 = vmul.f32 1.442695, %v511_v15 }
 0x364   : > { %1050 = vpow2.f32 %v512_v16 }
 0x36a   : > { %v1051_v17 = vpop.eup %1050 }
 0x36b   : > { %v514_v18 = vsel %vm486_vm4, %v1051_v17, 0.0 }
 0x36c   : > { %515 = vadd.xlane.f32.xlu1 %v514_v18 }
 0x36d   : > { %v569_v19 = vpop.xlane.xlu2 %568 }
 0x36e   : > { %v570_v20 = vsub.f32 %v566_v2, %v569_v19 }
 0x370   : > { %v571_v21 = vmul.f32 1.442695, %v570_v20 }
 0x372   : > { %1052 = vpow2.f32 %v571_v21 }
 0x375   : > { %v627_v22 = vpop.xlane.xlu2 %626 }
 0x376   : > { %v628_v29 = vsub.f32 %v624_v6, %v627_v22 }
 0x378   : > { %v1053_v23 = vpop.eup %1052  ;;  %v629_v31 = vmul.f32 1.442695, %v628_v29 }
 0x379   : > { %v573_v24 = vsel %vm486_vm4, %v1053_v23, 0.0 }
 0x37a   : > { %574 = vadd.xlane.f32.xlu1 %v573_v24 }
 0x37d   : > { %v685_v25 = vpop.xlane.xlu0 %684  ;;  %v521_v26 = vpop.permute.xlu2 %520 }
 0x37e   : > { %v686_v27 = vsub.f32 %v682_v11, %v685_v25  ;;  %v527_v28 = vsel %vm525_vm6, %v521_v26, 0 }
 0x37f   : > { %536 = vmatpush.bf16.msra.mxu2 %v527_v28 }
 0x380   : > { %v687_v30 = vmul.f32 1.442695, %v686_v27 }
 0x382   : > { %1054 = vpow2.f32 %v687_v30 }
 0x383   : > { %1056 = vpow2.f32 %v629_v31 }
 0x385   : > { %v696_v43 = vpop.permute.xlu2 %695 }
 0x386   : > { %v701_v45 = vsel %vm525_vm6, %v696_v43, 0 }
 0x388   : > { %v1055_v32 = vpop.eup %1054 }
 0x389   : > { %v689_v33 = vsel %vm486_vm4, %v1055_v32, 0.0  ;;  %v1057_v34 = vpop.eup %1056 }
 0x38a   : > { %690 = vadd.xlane.f32.xlu1 %v689_v33  ;;  %v631_v37 = vsel %vm486_vm4, %v1057_v34, 0.0 }
 0x390   : > { %v580_v35 = vpop.permute.xlu0 %579 }
 0x391   : > { %v585_v36 = vsel %vm525_vm6, %v580_v35, 0 }
 0x392   : > { %594 = vmatpush.bf16.msrb.mxu2 %v585_v36  ;;  %632 = vadd.xlane.f32.xlu1 %v631_v37 }
 0x398   : > { %v638_v38 = vpop.permute.xlu0 %637 }
 0x399   : > { %v643_v39 = vsel %vm525_vm6, %v638_v38, 0 }
 0x39a   : > { %652 = vmatpush.bf16.msrb.mxu1 %v643_v39 }
 0x3df   : > { %v516_v40 = vpop.xlane.xlu1 %515 }
 0x3e0   : > { %1058 = vrcp.f32 %v516_v40 }
 0x3e6   : > { %v1059_v41 = vpop.eup %1058 }
 0x3e7   : > { %v518_v42 = vmul.f32 %v1059_v41, %v1051_v17 }
 0x3e9   : > { %v519_v44 = vpack.c.bf16 %v518_v42, %v518_v42 }
 0x3eb   : > { %926 = vmatmul.msk.bf16.vlgmr.msra.gmra.mxu2 %vm486_vm4, %v519_v44 }
 0x3ec   : > { %710 = vmatpush.bf16.msra.mxu2 %v701_v45 }
 0x3ed   : > { %v575_v46 = vpop.xlane.xlu1 %574 }
 0x3ee   : > { %1060 = vrcp.f32 %v575_v46 }
 0x3f4   : > { %v1061_v47 = vpop.eup %1060 }
 0x3f5   : > { %v577_v48 = vmul.f32 %v1061_v47, %v1053_v23 }
 0x3f7   : > { %v578_v49 = vpack.c.bf16 %v577_v48, %v577_v48 }
 0x3fb   : > { %928 = vmatmul.msk.bf16.vlgmr.msrb.gmra.mxu2 %vm486_vm4, %v578_v49 }
 0x3fd   : > { %v691_v50 = vpop.xlane.xlu1 %690 }
 0x3fe   : > { %1062 = vrcp.f32 %v691_v50 }
 0x404   : > { %v1063_v51 = vpop.eup %1062 }
 0x405   : > { %v693_v52 = vmul.f32 %v1063_v51, %v1055_v32  ;;  %v633_v53 = vpop.xlane.xlu1 %632 }
 0x406   : > { %1064 = vrcp.f32 %v633_v53 }
 0x407   : > { %v694_v54 = vpack.c.bf16 %v693_v52, %v693_v52 }
 0x40b   : > { %932 = vmatmul.msk.bf16.vlgmr.msra.gmra.mxu2 %vm486_vm4, %v694_v54 }
 0x40c   : > { %v1065_v55 = vpop.eup %1064 }
 0x40d   : > { %v635_v56 = vmul.f32 %v1065_v55, %v1057_v34 }
 0x40f   : > { %v636_v57 = vpack.c.bf16 %v635_v56, %v635_v56 }
 0x411   : > { %930 = vmatmul.msk.bf16.vlgmr.msrb.gmra.mxu1 %vm486_vm4, %v636_v57 }
 0x46e   : > { %v538_v58 = vpop.f32.mrf.mxu2 }
 0x476   : > { %v540_v59 = vpop.f32.mrf.mxu2 }
 0x47e   : > { %v596_v60 = vpop.f32.mrf.mxu2 }
 0x47f   : > { %717 = vrot.lane.b32.xlu1 %v596_v60, %s1283_s23 }
 0x486   : > { %v598_v61 = vpop.f32.mrf.mxu2 }
 0x48e   : > { %v654_v62 = vpop.f32.mrf.mxu1  ;;  %v712_v63 = vpop.f32.mrf.mxu2 }
 0x48f   : > { %725 = vrot.lane.b32.xlu0 %v712_v63, %s1284_s11  ;;  %721 = vrot.lane.b32.xlu2 %v654_v62, %s1285_s25 }
 0x496   : > { %v656_v1 = vpop.f32.mrf.mxu1  ;;  %v714_v2 = vpop.f32.mrf.mxu2 }
 0x4e9   : > { %v722_v7 = vpop.permute.xlu2 %721 }
 0x4f1   : > { %v718_v5 = vpop.permute.xlu1 %717 }
 0x4f2   : > { %v728_v6 = vsel %vm486_vm4, %v538_v58, %v718_v5 }
 0x4f3   : > { %v730_v9 = vsel %vm729_vm7, %v728_v6, %v722_v7 }
 0x501   : > { %v726_v8 = vpop.permute.xlu0 %725 }
 0x502   : > { %v732_v10 = vsel %vm731_vm8, %v730_v9, %v726_v8 }
 0x503   : > { %v733_v11 = vpack.c.bf16 %v732_v10, %v732_v10 }
 0x505   : > { %941 = vmatmul.msk.bf16.vlgmr.msra.gmra.mxu0 %vm399_vm0, %v733_v11 }
 0x582   : > { %v767_v14 = vpop.f32.mrf.mxu0 }
 0x583   : > { %v771_v15 = vadd.f32 %v767_v14, %v738_v13 }
 0x585   : > { %772 = vst.msk [vmem:[%s394_s19] sm:$0xff] %vm399_vm0, %v771_v15 }
 0x586   : > { %1213 = shalt.err (!%p1210_p10)
}
 0x587   : > { %962 = dma.vmem_to_hbm [thread:$0]  (%p1400_p4), %s787_s20, 128, %s789_s22, %s774_s12  }
 0x58a   : > { %v769_v0 = vpop.f32.mrf.mxu0 }
 0x58b PF: > { %s1604_s23 = sld [smem:[#allocation17_spill]]  ;;  %s800_s11 = sand.u32 1, %s1252_s27  }
 0x58c   : > { %s801_s25 = scalar_lea.sflag [#allocation4], %s800_s11 }
 0x591   : > { %p1605_p11 = scmp.ge.s32.totalorder %s1604_s23, 2 }
 0x593   : > { %p979_p5 = pnand %p1605_p11, %p1404_p6 }
 0x595   : > { %p980_p13 = pneg %p979_p5 }
 0x597   : > { %1247 = dma.done.wait (%p980_p13), %s801_s25, 128  }
 0x598   : > { %1249 = vsyncadd (%p980_p13), %s801_s25, 4294967168  ;;  %s1606_s30 = sld [smem:[#allocation18_spill]]  ;;  %s1609_s27 = smov %s1256_s28 }
 0x599   : > { %s1607_s26 = sld [smem:[#allocation16_spill]] }
 0x59a   : > { %s1608_s29 = sld [smem:[#allocation19_spill]] }
 0x59e   : > { %p25_p0 = scmp.ge.s32.totalorder %s1606_s30, 4  }
 0x59f   : > { %s1610_s28 = smov %s1607_s26 }
 0x5a0   :  { %27 = sbr.rel (!%p25_p0) target bundleno = 11 (0xb), region = 118 }
 0x5a5   :  { %807 = vsyncpa [#allocation3], 1 }
 0x5a6   :  { %809 = vsyncpa [#allocation3 + $0x1], 1 }
 0x5a7   :  { %810 = vsyncpa [#allocation6], 1 }
 0x5a8   :  { %812 = vsyncpa [#allocation6 + $0x1], 1 }
 0x5a9   :  { %813 = vsyncpa [#allocation9], 1 }
 0x5aa   :  { %814 = vsyncpa [#allocation4], 1 }
 0x5ab   :  { %816 = vsyncpa [#allocation4 + $0x1], 1 }

</bundles_post_ra>
